<compile_context>
chip_gen: v7x
topology: tpu7x:2x2x1
jax: 0.10.0
libtpu: 0.0.40
codegen_flags: <defaults>
</compile_context>

<pallas_src>
import functools

import jax
import jax.numpy as jnp
from jax.experimental import pallas as pl
from jax.experimental.pallas import tpu as pltpu


def _round_up(x, m):
    return ((x + m - 1) // m) * m


def _cdiv(a, b):
    return (a + b - 1) // b


def _self_output_kernel(x_ref, wT_ref, params_ref, res_ref, o_ref, acc_ref,
                        *, eps, precision):
    # x_ref:      (tm, tk)  tile of hidden_state tokens (native/compute dtype)
    # wT_ref:     (tk, H)   pre-transposed dense weight slab
    # params_ref: (3, H)    packed [bias; gamma; beta] (f32)
    # res_ref:    (tm, H)   residual ("input") tile
    # o_ref:      (tm, H)   output tile
    # acc_ref:    (tm, H)   f32 accumulator scratch (persists across k steps)
    k = pl.program_id(1)

    @pl.when(k == 0)
    def _init():
        acc_ref[...] = jnp.zeros_like(acc_ref)

    # dense: partial y += x_tile @ W^T_tile, f32 accumulation on the MXU.
    acc_ref[...] += jax.lax.dot_general(
        x_ref[...],
        wT_ref[...],
        dimension_numbers=(((1,), (0,)), ((), ())),
        precision=precision,
        preferred_element_type=jnp.float32,
    )

    @pl.when(k == pl.num_programs(1) - 1)
    def _finalize():
        p = params_ref[...].astype(jnp.float32)            # (3, H)
        bias, gamma, beta = p[0:1, :], p[1:2, :], p[2:3, :]

        # dropout is identity at inference; bias + residual add in f32.
        y = acc_ref[...] + bias + res_ref[...].astype(jnp.float32)

        # Two-pass LayerNorm statistics in f32 (torch-style numerics).
        inv_h = jnp.float32(1.0 / y.shape[-1])
        mean = jnp.sum(y, axis=-1, keepdims=True) * inv_h
        d = y - mean
        var = jnp.sum(d * d, axis=-1, keepdims=True) * inv_h
        inv = jax.lax.rsqrt(var + jnp.float32(eps))        # EUP rsqrt

        out = d * inv
        if jnp.dtype(o_ref.dtype) == jnp.dtype(jnp.bfloat16):
            # bf16 epilogue: halves VALU / vector-store work, stats stay f32.
            out = (out.astype(jnp.bfloat16) * gamma.astype(jnp.bfloat16)
                   + beta.astype(jnp.bfloat16))
        else:
            out = out * gamma + beta
        o_ref[...] = out.astype(o_ref.dtype)


def syntax_self_output(hidden_state, residual, weight, bias, gamma, beta,
                       *, eps=1e-12, row_tile=None, compute_dtype=None):
    """hidden_state, residual: [B, S, H]. weight: [H, H] (torch layout [out, in]).

    compute_dtype: optionally cast matmul operands (e.g. jnp.bfloat16) for
    inference; accumulation / LayerNorm stats stay in f32 either way.
    """
    B, S, H = hidden_state.shape
    N = B * S
    out_dtype = hidden_state.dtype
    mm_dtype = (jnp.dtype(compute_dtype) if compute_dtype is not None
                else jnp.dtype(hidden_state.dtype))

    x2 = hidden_state.reshape(N, H).astype(mm_dtype)
    r2 = residual.reshape(N, H)
    # One-time transpose of the torch [out, in] weight -> [in, out]; contraction
    # in-kernel is then a plain x @ W^T with no per-step weight transpose.
    wT = weight.T.astype(mm_dtype)
    # Pack bias / gamma / beta into a single resident (3, H) f32 operand.
    params = jnp.stack([bias, gamma, beta]).astype(jnp.float32)

    act_bytes = jnp.dtype(mm_dtype).itemsize
    res_bytes = jnp.dtype(residual.dtype).itemsize
    out_bytes = jnp.dtype(out_dtype).itemsize
    w_bytes = jnp.dtype(mm_dtype).itemsize

    # ---- generation-aware VMEM budget --------------------------------------
    try:
        vmem_cap = int(pltpu.get_tpu_info().vmem_capacity_bytes)
    except Exception:  # hardware-query fallback only
        vmem_cap = 64 * 1024 * 1024
    budget = (vmem_cap * 3) // 4          # ~48 MiB on v7x, ~96 MiB on v5e/v6e

    use_buffered = hasattr(pl, "Buffered")
    w_buf = 1 if use_buffered else 2

    # ---- K (input-feature) tiling only when the resident weight is too big --
    tk = H
    w_budget = budget // 3
    if H % 128 == 0 and w_buf * H * H * w_bytes > w_budget:
        cands = [t for t in range(128, H + 1, 128)
                 if H % t == 0 and w_buf * t * H * w_bytes <= w_budget]
        if cands:
            tk = max(cands)

    def _footprint(tm):
        return (2 * tm * tk * act_bytes          # hidden_state tiles (dbl-buffered)
                + 2 * tm * H * res_bytes         # residual tiles
                + 2 * tm * H * out_bytes         # output tiles
                + w_buf * tk * H * w_bytes       # resident weight
                + w_buf * 8 * H * 4              # packed params (sublane-padded)
                + tm * H * 4                     # f32 accumulator scratch
                + 3 * tm * H * 4                 # f32 epilogue temporaries
                + (1 << 20))                     # Mosaic internal scratch headroom

    # ---- row (token) tiling --------------------------------------------------
    n_cap = max(8, _round_up(N, 8))
    if row_tile is not None:
        tm = max(8, (min(row_tile, n_cap) // 8) * 8)
    else:
        tm = None
        for cand in (1024, 512, 256):            # multiples of 256 (v6e/v7x MXU)
            if cand <= n_cap and _footprint(cand) <= budget:
                tm = cand
                break
        if tm is None:
            tm = max(8, (min(256, n_cap) // 8) * 8)
    # Prefer >= 2 row steps (pipeline overlap / megacore) when the tile is big.
    if _cdiv(N, tm) < 2 and tm >= 512:
        tm //= 2
    # Safety: shrink until the footprint fits the scoped-VMEM budget.
    while _footprint(tm) > budget and tm > 8:
        tm = max(8, ((tm // 2) // 8) * 8)

    grid = (_cdiv(N, tm), H // tk)               # ragged last row block is OK:
                                                 # OOB reads padded, OOB writes dropped

    est = _footprint(tm)
    vmem_limit = int(min(max(est * 5 // 4, 32 * 1024 * 1024), budget))

    cost = pl.CostEstimate(
        flops=2 * N * H * H + 10 * N * H,
        transcendentals=N,
        bytes_accessed=(N * H * (act_bytes + res_bytes + out_bytes)
                        + H * H * w_bytes + 3 * H * 4),
    )

    precision = (jax.lax.Precision.HIGHEST
                 if mm_dtype == jnp.dtype(jnp.float32)
                 else jax.lax.Precision.DEFAULT)
    kern = functools.partial(_self_output_kernel, eps=float(eps),
                             precision=precision)

    def _build(buffered):
        # Resident operands: constant index_map -> never re-fetched; a single
        # buffer halves their VMEM footprint.  Only apply to the weight when it
        # is fully resident (tk == H); a K-tiled weight must stay double-buffered.
        res_kw = dict(pipeline_mode=pl.Buffered(1)) if buffered else {}
        w_kw = res_kw if tk == H else {}
        grid_spec = pltpu.PrefetchScalarGridSpec(
            num_scalar_prefetch=0,
            grid=grid,
            in_specs=[
                pl.BlockSpec((tm, tk), lambda i, k: (i, k)),            # hidden tile
                pl.BlockSpec((tk, H), lambda i, k: (k, 0), **w_kw),     # weight^T
                pl.BlockSpec((3, H), lambda i, k: (0, 0), **res_kw),    # bias/gamma/beta
                pl.BlockSpec((tm, H), lambda i, k: (i, 0)),             # residual tile
            ],
            out_specs=pl.BlockSpec((tm, H), lambda i, k: (i, 0)),
            scratch_shapes=[pltpu.VMEM((tm, H), jnp.float32)],
        )
        return pl.pallas_call(
            kern,
            out_shape=jax.ShapeDtypeStruct((N, H), out_dtype),
            grid_spec=grid_spec,
            compiler_params=pltpu.CompilerParams(
                dimension_semantics=("parallel", "arbitrary"),
                vmem_limit_bytes=vmem_limit,
            ),
            cost_estimate=cost,
        )

    args = (x2, wT, params, r2)
    if use_buffered:
        try:
            out2 = _build(True)(*args)
        except (TypeError, pltpu.LoweringException):
            # pipeline_mode=pl.Buffered(1) unsupported in this jax version:
            # identical semantics with default (double) buffering.
            out2 = _build(False)(*args)
    else:
        out2 = _build(False)(*args)

    return out2.reshape(B, S, H)


def _reference(hidden_state, residual, weight, bias, gamma, beta, eps=1e-12):
    y = jnp.einsum("bsh,oh->bso", hidden_state, weight,
                   precision=jax.lax.Precision.HIGHEST) + bias
    y = y + residual
    mean = jnp.mean(y, axis=-1, keepdims=True)
    var = jnp.mean((y - mean) ** 2, axis=-1, keepdims=True)
    return (y - mean) / jnp.sqrt(var + eps) * gamma + beta


if __name__ == "__main__":
    key = jax.random.PRNGKey(0)
    B, S, H = 2, 8, 32  # small n_embd for the synthetic test

    k1, k2, k3, k4 = jax.random.split(key, 4)
    hidden_state = jax.random.normal(k1, (B, S, H), dtype=jnp.float32)
    residual = jax.random.normal(k2, (B, S, H), dtype=jnp.float32)

    # Deterministic parameter init (nn.Linear-style uniform, LN affine = 1/0)
    bound = 1.0 / (H ** 0.5)
    weight = jax.random.uniform(k3, (H, H), minval=-bound, maxval=bound,
                                dtype=jnp.float32)
    bias = jax.random.uniform(k4, (H,), minval=-bound, maxval=bound,
                              dtype=jnp.float32)
    gamma = jnp.ones((H,), dtype=jnp.float32)
    beta = jnp.zeros((H,), dtype=jnp.float32)

    out = syntax_self_output(hidden_state, residual, weight, bias, gamma, beta)
    out = jax.block_until_ready(out)

    ref = _reference(hidden_state, residual, weight, bias, gamma, beta)
    assert out.shape == (B, S, H)
    assert jnp.allclose(out, ref, atol=1e-2, rtol=1e-2), "mismatch vs reference"

    print("KERNEL_OK")
</pallas_src>

<mosaic_0001>
module attributes {stable_mosaic.version = 11 : i64} {
  func.func @_self_output_kernel(%arg0: i32, %arg1: i32, %arg2: memref<16x32xf32, #tpu.memory_space<vmem>>, %arg3: memref<32x32xf32, #tpu.memory_space<vmem>>, %arg4: memref<3x32xf32, #tpu.memory_space<vmem>>, %arg5: memref<16x32xf32, #tpu.memory_space<vmem>>, %arg6: memref<16x32xf32, #tpu.memory_space<vmem>>, %arg7: memref<16x32xf32, #tpu.memory_space<vmem>>) attributes {dimension_semantics = [#tpu.dimension_semantics<parallel>, #tpu.dimension_semantics<arbitrary>], iteration_bounds = array<i64: 1, 1>, scalar_prefetch = 0 : i64, scratch_operands = 1 : i64, tpu.core_type = #tpu.core_type<tc>, window_params = [{transform_indices = @transform_0, window_bounds = array<i64: 16, 32>}, {pipeline_mode = #tpu.pipeline_mode<synchronous>, transform_indices = @transform_1, window_bounds = array<i64: 32, 32>}, {pipeline_mode = #tpu.pipeline_mode<synchronous>, transform_indices = @transform_2, window_bounds = array<i64: 3, 32>}, {transform_indices = @transform_3, window_bounds = array<i64: 16, 32>}, {transform_indices = @transform_4, window_bounds = array<i64: 16, 32>}]} {
    %c0_i32 = arith.constant 0 : i32
    %0 = arith.cmpi eq, %arg1, %c0_i32 : i32
    %1 = arith.extui %0 : i1 to i32
    %c0_i32_0 = arith.constant 0 : i32
    %2 = arith.cmpi ne, %1, %c0_i32_0 : i32
    scf.if %2 {
      %cst_10 = arith.constant 0.000000e+00 : f32
      %12 = vector.broadcast %cst_10 : f32 to vector<16x32xf32>
      %c0_11 = arith.constant 0 : index
      %c0_12 = arith.constant 0 : index
      %13 = vector.load %arg7[%c0_11, %c0_12] : memref<16x32xf32, #tpu.memory_space<vmem>>, vector<16x32xf32>
      tpu.vector_store %arg7[%c0_11, %c0_12], %12 {strides = array<i32>} : memref<16x32xf32, #tpu.memory_space<vmem>>, vector<16x32xf32>,
    } else {
    }
    %c0 = arith.constant 0 : index
    %c0_1 = arith.constant 0 : index
    %3 = vector.load %arg7[%c0, %c0_1] : memref<16x32xf32, #tpu.memory_space<vmem>>, vector<16x32xf32>
    %c0_2 = arith.constant 0 : index
    %c0_3 = arith.constant 0 : index
    %4 = vector.load %arg2[%c0_2, %c0_3] : memref<16x32xf32, #tpu.memory_space<vmem>>, vector<16x32xf32>
    %c0_4 = arith.constant 0 : index
    %c0_5 = arith.constant 0 : index
    %5 = vector.load %arg3[%c0_4, %c0_5] : memref<32x32xf32, #tpu.memory_space<vmem>>, vector<32x32xf32>
    %cst = arith.constant dense<0.000000e+00> : vector<16x32xf32>
    %6 = tpu.matmul %4, %5, %cst {dimension_numbers = #tpu.dot_dimension_numbers<[1], [0], [0], [1], [0, 0, 1, 1], [], []>, precision = #tpu.contract_precision<fp32>} : vector<16x32xf32>, vector<32x32xf32>, vector<16x32xf32> -> vector<16x32xf32>
    %7 = arith.addf %3, %6 : vector<16x32xf32>
    %c0_6 = arith.constant 0 : index
    %c0_7 = arith.constant 0 : index
    %8 = vector.load %arg7[%c0_6, %c0_7] : memref<16x32xf32, #tpu.memory_space<vmem>>, vector<16x32xf32>
    tpu.vector_store %arg7[%c0_6, %c0_7], %7 {strides = array<i32>} : memref<16x32xf32, #tpu.memory_space<vmem>>, vector<16x32xf32>,
    %c0_i32_8 = arith.constant 0 : i32
    %9 = arith.cmpi eq, %arg1, %c0_i32_8 : i32
    %10 = arith.extui %9 : i1 to i32
    %c0_i32_9 = arith.constant 0 : i32
    %11 = arith.cmpi ne, %10, %c0_i32_9 : i32
    scf.if %11 {
      %c0_10 = arith.constant 0 : index
      %c0_11 = arith.constant 0 : index
      %12 = vector.load %arg4[%c0_10, %c0_11] : memref<3x32xf32, #tpu.memory_space<vmem>>, vector<3x32xf32>
      %13 = vector.extract_strided_slice %12 {offsets = [0, 0], sizes = [1, 32], strides = [1, 1]} : vector<3x32xf32> to vector<1x32xf32>
      %14 = vector.extract_strided_slice %12 {offsets = [1, 0], sizes = [1, 32], strides = [1, 1]} : vector<3x32xf32> to vector<1x32xf32>
      %15 = vector.extract_strided_slice %12 {offsets = [2, 0], sizes = [1, 32], strides = [1, 1]} : vector<3x32xf32> to vector<1x32xf32>
      %c0_12 = arith.constant 0 : index
      %c0_13 = arith.constant 0 : index
      %16 = vector.load %arg7[%c0_12, %c0_13] : memref<16x32xf32, #tpu.memory_space<vmem>>, vector<16x32xf32>
      %17 = vector.broadcast %13 : vector<1x32xf32> to vector<16x32xf32>
      %18 = arith.addf %16, %17 : vector<16x32xf32>
      %c0_14 = arith.constant 0 : index
      %c0_15 = arith.constant 0 : index
      %19 = vector.load %arg5[%c0_14, %c0_15] : memref<16x32xf32, #tpu.memory_space<vmem>>, vector<16x32xf32>
      %20 = arith.addf %18, %19 : vector<16x32xf32>
      %cst_16 = arith.constant dense<0.000000e+00> : vector<16xf32>
      %21 = vector.multi_reduction <add>, %20, %cst_16 [1] : vector<16x32xf32> to vector<16xf32>
      %22 = vector.shape_cast %21 : vector<16xf32> to vector<16x1xf32>
      %cst_17 = arith.constant 3.125000e-02 : f32
      %23 = vector.broadcast %cst_17 : f32 to vector<16x1xf32>
      %24 = arith.mulf %22, %23 : vector<16x1xf32>
      %25 = vector.broadcast %24 : vector<16x1xf32> to vector<16x32xf32>
      %26 = arith.subf %20, %25 : vector<16x32xf32>
      %27 = arith.mulf %26, %26 : vector<16x32xf32>
      %cst_18 = arith.constant dense<0.000000e+00> : vector<16xf32>
      %28 = vector.multi_reduction <add>, %27, %cst_18 [1] : vector<16x32xf32> to vector<16xf32>
      %29 = vector.shape_cast %28 : vector<16xf32> to vector<16x1xf32>
      %cst_19 = arith.constant 3.125000e-02 : f32
      %30 = vector.broadcast %cst_19 : f32 to vector<16x1xf32>
      %31 = arith.mulf %29, %30 : vector<16x1xf32>
      %cst_20 = arith.constant 9.99999996E-13 : f32
      %32 = vector.broadcast %cst_20 : f32 to vector<16x1xf32>
      %33 = arith.addf %31, %32 : vector<16x1xf32>
      %34 = math.rsqrt %33 : vector<16x1xf32>
      %35 = vector.broadcast %34 : vector<16x1xf32> to vector<16x32xf32>
      %36 = arith.mulf %26, %35 : vector<16x32xf32>
      %37 = vector.broadcast %14 : vector<1x32xf32> to vector<16x32xf32>
      %38 = arith.mulf %36, %37 : vector<16x32xf32>
      %39 = vector.broadcast %15 : vector<1x32xf32> to vector<16x32xf32>
      %40 = arith.addf %38, %39 : vector<16x32xf32>
      %c0_21 = arith.constant 0 : index
      %c0_22 = arith.constant 0 : index
      %41 = vector.load %arg6[%c0_21, %c0_22] : memref<16x32xf32, #tpu.memory_space<vmem>>, vector<16x32xf32>
      tpu.vector_store %arg6[%c0_21, %c0_22], %40 {strides = array<i32>} : memref<16x32xf32, #tpu.memory_space<vmem>>, vector<16x32xf32>,
    } else {
    }
    return
  }
  func.func @transform_0(%arg0: i32, %arg1: i32) -> (i32, i32) {
    %c0_i32 = arith.constant 0 : i32
    return %arg0, %arg1 : i32, i32
  }
  func.func @transform_1(%arg0: i32, %arg1: i32) -> (i32, i32) {
    %c0_i32 = arith.constant 0 : i32
    %c0_i32_0 = arith.constant 0 : i32
    return %arg1, %c0_i32 : i32, i32
  }
  func.func @transform_2(%arg0: i32, %arg1: i32) -> (i32, i32) {
    %c0_i32 = arith.constant 0 : i32
    %c0_i32_0 = arith.constant 0 : i32
    %c0_i32_1 = arith.constant 0 : i32
    return %c0_i32, %c0_i32_0 : i32, i32
  }
  func.func @transform_3(%arg0: i32, %arg1: i32) -> (i32, i32) {
    %c0_i32 = arith.constant 0 : i32
    %c0_i32_0 = arith.constant 0 : i32
    return %arg0, %c0_i32 : i32, i32
  }
  func.func @transform_4(%arg0: i32, %arg1: i32) -> (i32, i32) {
    %c0_i32 = arith.constant 0 : i32
    %c0_i32_0 = arith.constant 0 : i32
    return %arg0, %c0_i32 : i32, i32
  }
}

</mosaic_0001>

<bundles_post_ra>
// kernel: tpu_custom_call.1
= control target key start
LH: loop header
LB: loop body
LE: loop exit
PB: predicated region body
PF: predicated region fallthrough
CT: control target
= control target key end

     0   :  { %9 = vsyncpa [#allocation4], 0  ;;  %s1078_s0 = inlined_call_operand.hbm [shape: f32[16,32], index: 0, kind: input, shape index: {}]   ;;  %s1079_s1 = inlined_call_operand.hbm [shape: f32[32,32], index: 1, kind: input, shape index: {}]   ;;  %s1080_s2 = inlined_call_operand.vmem [shape: f32[3,32], index: 2, kind: input, shape index: {}]   ;;  %s1081_s3 = inlined_call_operand.hbm [shape: f32[16,32], index: 3, kind: input, shape index: {}]   ;;  %s1082_s4 = inlined_call_operand.hbm [shape: f32[16,32], index: 4, kind: output, shape index: {}]  }
   0x1   :  { %10 = vsyncpa [#allocation7], 0 }
   0x2   :  { %11 = vsyncpa [#allocation5], 0  ;;  %s952_s15 = smov [#allocation6]   ;;  %s953_s17 = smov [#allocation3]  }
   0x3   :  { %s29_s16 = sshll.u32 %s952_s15, 4  ;;  %s17_s18 = sshll.u32 %s953_s17, 4  ;;  %s30_s16 = int_to_ptr.vmem [resolvable:$true] %s29_s16  ;;  %s984_s18 = int_to_ptr.vmem [resolvable:$true] %s17_s18 }
   0x4   :  { %s858_s21 = scalar_lea.hbm %s1079_s1, 512 }
   0x5   :  { %p859_p0 = scmp.ne.s32.totalorder %s1079_s1, %s858_s21  ;;  %p862_p1 = scmp.lt.u32.totalorder %s858_s21, %s1079_s1 }
   0x7   :  { %p864_p2 = pnand %p862_p1, %p859_p0 }
   0x9   :  { %867 = shalt.err (!%p864_p2)
}
   0xa   :  { %s868_s26 = scalar_lea.vmem %s30_s16, 512  ;;  %p873_p4 = scmp.lt.s32.totalorder %s30_s16, %s30_s16 }
   0xb   :  { %p869_p3 = scmp.ne.s32.totalorder %s30_s16, %s868_s26  ;;  %p874_p5 = scmp.lt.s32.totalorder %s868_s26, %s868_s26 }
   0xd   :  { %p875_p6 = por %p874_p5, %p873_p4 }
   0xf   :  { %p876_p7 = pnand %p875_p6, %p869_p3 }
  0x11   :  { %879 = shalt.err (!%p876_p7)
}
  0x12   :  { %s954_s27 = smov 128   ;;  %s955_s28 = smov 8  }
  0x13   :  { %35 = dma.hbm_to_vmem [thread:$0]  %s1079_s1, 512, %s30_s16, [#allocation7], %s954_s27, %s954_s27, %s955_s28  }
  0x14   :  { %s880_s7 = scalar_lea.hbm %s1078_s0, 256 }
  0x15   :  { %p881_p8 = scmp.ne.s32.totalorder %s1078_s0, %s880_s7  ;;  %p884_p9 = scmp.lt.u32.totalorder %s880_s7, %s1078_s0 }
  0x17   :  { %p886_p10 = pnand %p884_p9, %p881_p8 }
  0x19   :  { %889 = shalt.err (!%p886_p10)
}
  0x1a   :  { %s890_s12 = scalar_lea.vmem %s984_s18, 256  ;;  %p895_p12 = scmp.lt.s32.totalorder %s984_s18, %s984_s18 }
  0x1b   :  { %p891_p11 = scmp.ne.s32.totalorder %s984_s18, %s890_s12  ;;  %p896_p13 = scmp.lt.s32.totalorder %s890_s12, %s890_s12 }
  0x1d   :  { %p897_p0 = por %p896_p13, %p895_p12 }
  0x1f   :  { %p898_p1 = pnand %p897_p0, %p891_p11 }
  0x21   :  { %901 = shalt.err (!%p898_p1)
}
  0x22   :  { %23 = dma.hbm_to_vmem [thread:$0]  %s1078_s0, 256, %s984_s18, [#allocation4], %s954_s27, %s954_s27, %s955_s28  }
  0x23   :  { %s956_s14 = smov [#allocation8]   ;;  %s902_s19 = scalar_lea.hbm %s1081_s3, 256 }
  0x24   :  { %s43_s15 = sshll.u32 %s956_s14, 4  ;;  %p903_p2 = scmp.ne.s32.totalorder %s1081_s3, %s902_s19  ;;  %s44_s15 = int_to_ptr.vmem [resolvable:$true] %s43_s15 }
  0x25   :  { %p906_p3 = scmp.lt.u32.totalorder %s902_s19, %s1081_s3 }
  0x27   :  { %p908_p4 = pnand %p906_p3, %p903_p2 }
  0x29   :  { %911 = shalt.err (!%p908_p4)
}
  0x2a   :  { %s912_s24 = scalar_lea.vmem %s44_s15, 256  ;;  %p917_p6 = scmp.lt.s32.totalorder %s44_s15, %s44_s15 }
  0x2b   :  { %p913_p5 = scmp.ne.s32.totalorder %s44_s15, %s912_s24  ;;  %p918_p7 = scmp.lt.s32.totalorder %s912_s24, %s912_s24 }
  0x2d   :  { %p919_p8 = por %p918_p7, %p917_p6 }
  0x2f   :  { %p920_p9 = pnand %p919_p8, %p913_p5 }
  0x31   :  { %923 = shalt.err (!%p920_p9)
}
  0x32   :  { %49 = dma.hbm_to_vmem [thread:$0]  %s1081_s3, 256, %s44_s15, [#allocation7], %s954_s27, %s954_s27, %s955_s28  }
  0x33   :  { %946 = dma.done.wait [#allocation4], 256  }
  0x34   :  { %947 = vsyncadd [#allocation4], 4294967040 }
  0x35   :  { %948 = dma.done.wait [#allocation7], 768  }
  0x36   :  { %949 = vsyncadd [#allocation7], 4294966528  ;;  %vm63_vm0 = vcmask 261120   ;;  %v70_v0 = vld [vmem:[#allocation6] sm:$0xff]  ;;  %v71_v1 = vld [vmem:[#allocation6 + $0x8] sm:$0xff]  ;;  %v957_v46 = vmov 0.0   ;;  %v619_v47 = vlaneseq }
  0x37   :  { %v72_v2 = vld [vmem:[#allocation6 + $0x10] sm:$0xff]  ;;  %v82_v3 = vand.u32 4294901760, %v70_v0  ;;  %v85_v4 = vand.u32 4294901760, %v71_v1  ;;  %v73_v5 = vld [vmem:[#allocation6 + $0x18] sm:$0xff]  ;;  %65 = vst.msk [vmem:[#allocation2 + $0x8] sm:$0xff] %vm63_vm0, %v957_v46  ;;  %64 = vst.msk [vmem:[#allocation2] sm:$0xff] %vm63_vm0, %v957_v46 }
  0x38   :  { %v88_v6 = vand.u32 4294901760, %v72_v2  ;;  %v68_v7 = vld [vmem:[#allocation3] sm:$0xff]  ;;  %v69_v8 = vld [vmem:[#allocation3 + $0x8] sm:$0xff]  ;;  %v91_v9 = vand.u32 4294901760, %v73_v5  ;;  %v620_v56 = vshrl.u32 %v619_v47, 7 }
  0x39   :  { %v76_v10 = vsel %vm63_vm0, %v68_v7, 0  ;;  %v79_v11 = vsel %vm63_vm0, %v69_v8, 0  ;;  %v789_v12 = vpack.c.bf16 %v85_v4, %v82_v3  ;;  %v172_v15 = vsub.f32 %v70_v0, %v82_v3  ;;  %v616_v60 = vld [vmem:[%s1080_s2] sm:$0x7]  ;;  %v626_v3 = vld [vmem:[#allocation8 + $0x8] sm:$0xff]  ;;  %s958_s2 = smov [#allocation9]  }
  0x3a   :  { %v1038_v13 = vand.u32 4294901760, %v76_v10  ;;  %v1040_v14 = vand.u32 4294901760, %v79_v11  ;;  %v793_v16 = vpack.c.bf16 %v91_v9, %v88_v6  ;;  %v179_v17 = vsub.f32 %v71_v1, %v85_v4  ;;  %v625_v0 = vld [vmem:[#allocation8] sm:$0xff]  ;;  %s674_s26 = sshll.u32 %s958_s2, 4  ;;  %s675_s26 = int_to_ptr.vmem [resolvable:$true] %s674_s26 }
  0x3b   :  { %v186_v18 = vsub.f32 %v72_v2, %v88_v6  ;;  %v193_v19 = vsub.f32 %v73_v5, %v91_v9  ;;  %790 = vmatprep.subr.bf16.mxu1 %v789_v12  ;;  %814 = vmatprep.subr.bf16.mxu0 %v789_v12  ;;  %v173_v22 = vand.u32 4294901760, %v172_v15  ;;  %v621_v59 = vsub.s32 0, %v620_v56  ;;  %s924_s29 = scalar_lea.vmem %s675_s26, 256  ;;  %p929_p11 = scmp.lt.s32.totalorder %s675_s26, %s675_s26 }
  0x3c   :  { %v151_v20 = vsub.f32 %v76_v10, %v1038_v13  ;;  %v161_v21 = vsub.f32 %v79_v11, %v1040_v14  ;;  %792 = vmatpush3.bf16.msra.mxu1 %v789_v12  ;;  %816 = vmatpush3.bf16.msra.mxu0 %v789_v12  ;;  %v180_v23 = vand.u32 4294901760, %v179_v17  ;;  %v805_v44 = vpack.c.bf16 %v179_v17, %v172_v15  ;;  %p925_p10 = scmp.ne.s32.totalorder %s675_s26, %s924_s29  ;;  %p930_p12 = scmp.lt.s32.totalorder %s924_s29, %s924_s29 }
  0x3d   :  { %v187_v24 = vand.u32 4294901760, %v186_v18  ;;  %v194_v25 = vand.u32 4294901760, %v193_v19  ;;  %794 = vmatprep.subr.bf16.mxu1 %v793_v16  ;;  %818 = vmatprep.subr.bf16.mxu0 %v793_v16  ;;  %v174_v28 = vsub.f32 %v172_v15, %v173_v22  ;;  %v809_v45 = vpack.c.bf16 %v193_v19, %v186_v18 }
  0x3e   :  { %v152_v26 = vand.u32 4294901760, %v151_v20  ;;  %v162_v27 = vand.u32 4294901760, %v161_v21  ;;  %v181_v29 = vsub.f32 %v179_v17, %v180_v23  ;;  %v821_v30 = vpack.c.bf16 %v180_v23, %v173_v22  ;;  %v67_v49 = vld [vmem:[#allocation2 + $0x8] sm:$0xff]  ;;  %v66_v53 = vld [vmem:[#allocation2] sm:$0xff]  ;;  %p931_p13 = por %p930_p12, %p929_p11 }
  0x3f   :  { %v188_v31 = vsub.f32 %v186_v18, %v187_v24  ;;  %v195_v32 = vsub.f32 %v193_v19, %v194_v25  ;;  %v175_v35 = vand.u32 4294901760, %v174_v28  ;;  %v825_v43 = vpack.c.bf16 %v194_v25, %v187_v24 }
  0x40   :  { %v153_v33 = vsub.f32 %v151_v20, %v152_v26  ;;  %764 = vmatprep.mubr.f32.mxu0 %v152_v26  ;;  %v163_v34 = vsub.f32 %v161_v21, %v162_v27  ;;  %796 = vmatpush3.bf16.msra.mxu1 %v793_v16  ;;  %v182_v36 = vand.u32 4294901760, %v181_v29  ;;  %v622_v61 = vrot.slane %v616_v60, %v621_v59  ;;  %p932_p0 = pnand %p931_p13, %p925_p10 }
  0x41   :  { %820 = vmatpush3.bf16.msra.mxu0 %v793_v16  ;;  %v189_v37 = vand.u32 4294901760, %v188_v31  ;;  %v196_v38 = vand.u32 4294901760, %v195_v32  ;;  %v657_v24 = vsub.s32 1, %v620_v56  ;;  %v663_v25 = vsub.s32 2, %v620_v56 }
  0x42   :  { %v154_v39 = vand.u32 4294901760, %v153_v33  ;;  %v164_v40 = vand.u32 4294901760, %v163_v34  ;;  %822 = vmatprep.subr.bf16.mxu0 %v821_v30  ;;  %v797_v41 = vpack.c.bf16 %v182_v36, %v175_v35 }
  0x43   :  { %v801_v42 = vpack.c.bf16 %v196_v38, %v189_v37  ;;  %v658_v26 = vrot.slane %v616_v60, %v657_v24  ;;  %v664_v29 = vrot.slane %v616_v60, %v663_v25 }
  0x44   :  { %731 = vmatprep.mubr.f32.mxu1 %v154_v39  ;;  %765 = vmatmul.mubr.f32.vlgmr.msra.gmra.mrb[0].mxu0 %v162_v27 }
  0x45   :  { %732 = vmatmul.mubr.f32.vlgmr.msra.gmra.mrb[0].mxu1 %v164_v40  ;;  %798 = vmatprep.subr.bf16.mxu1 %v797_v41 }
  0x46   :  { %800 = vmatpush3.bf16.msra.mxu1 %v797_v41  ;;  %824 = vmatpush3.bf16.msra.mxu0 %v821_v30 }
  0x47   :  { %802 = vmatprep.subr.bf16.mxu1 %v801_v42  ;;  %826 = vmatprep.subr.bf16.mxu0 %v825_v43 }
  0x48   :  { %742 = vmatprep.mubr.f32.mxu1 %v1038_v13  ;;  %775 = vmatprep.mubr.f32.mxu0 %v1038_v13 }
  0x4a   :  { %804 = vmatpush3.bf16.msra.mxu1 %v801_v42  ;;  %828 = vmatpush3.bf16.msra.mxu0 %v825_v43 }
  0x4b   :  { %806 = vmatprep.subr.bf16.mxu1 %v805_v44  ;;  %830 = vmatprep.subr.bf16.mxu0 %v789_v12 }
  0x4d   :  { %743 = vmatmul.mubr.f32.vlgmr.msra.gmra.mrb[0].mxu1 %v1040_v14  ;;  %776 = vmatmul.mubr.f32.vlgmr.msra.gmra.mrb[0].mxu0 %v1040_v14 }
  0x4e   :  { %808 = vmatpush3.bf16.msra.mxu1 %v805_v44  ;;  %832 = vmatpush3.bf16.msra.mxu0 %v789_v12 }
  0x4f   :  { %810 = vmatprep.subr.bf16.mxu1 %v809_v45  ;;  %834 = vmatprep.subr.bf16.mxu0 %v793_v16 }
  0x50   :  { %753 = vmatprep.mubr.f32.mxu1 %v151_v20  ;;  %786 = vmatprep.mubr.f32.mxu0 %v1038_v13 }
  0x52   :  { %812 = vmatpush3.bf16.msra.mxu1 %v809_v45  ;;  %836 = vmatpush3.bf16.msra.mxu0 %v793_v16 }
  0x55   :  { %754 = vmatmul.mubr.f32.vlgmr.msra.gmra.mrb[0].mxu1 %v161_v21  ;;  %787 = vmatmul.mubr.f32.vlgmr.msra.gmra.mrb[0].mxu0 %v1040_v14 }
 0x128   :  { %v755_v48 = vpop.f32.mrb[0].mxu1  ;;  %v788_v50 = vpop.f32.mrb[0].mxu0 }
 0x129   :  { %v837_v51 = vadd.f32 %v788_v50, %v755_v48  ;;  %v343_v52 = vpop.f32.mrb[1].mxu1  ;;  %v599_v54 = vpop.f32.mrb[1].mxu0 }
 0x12a   :  { %v838_v55 = vadd.f32 %v599_v54, %v343_v52 }
 0x12b   :  { %v610_v57 = vadd.f32 %v837_v51, %v67_v49 }
 0x12c   :  { %v609_v58 = vadd.f32 %v838_v55, %v66_v53 }
 0x12d   :  { %612 = vst.msk [vmem:[#allocation2 + $0x8] sm:$0xff] %vm63_vm0, %v610_v57 }
 0x12e   :  { %611 = vst.msk [vmem:[#allocation2] sm:$0xff] %vm63_vm0, %v609_v58 }
 0x134   :  { %v618_v62 = vld [vmem:[#allocation2 + $0x8] sm:$0xff] }
 0x135   :  { %v617_v63 = vld [vmem:[#allocation2] sm:$0xff]  ;;  %v624_v2 = vadd.f32 %v622_v61, %v618_v62 }
 0x136   :  { %v623_v1 = vadd.f32 %v622_v61, %v617_v63 }
 0x137   :  { %v628_v6 = vadd.f32 %v626_v3, %v624_v2 }
 0x138   :  { %v627_v4 = vadd.f32 %v625_v0, %v623_v1 }
 0x139   :  { %v632_v7 = vsel %vm63_vm0, %v628_v6, 0.0 }
 0x13a   :  { %v629_v5 = vsel %vm63_vm0, %v627_v4, 0.0 }
 0x13b   :  { %630 = vadd.xlane.f32.xlu0 %v629_v5 }
 0x13f   :  { %633 = vadd.xlane.f32.xlu0 %v632_v7 }
 0x1c8   :  { %v631_v8 = vpop.xlane.xlu0 %630 }
 0x1c9   :  { %v635_v9 = vmul.f32 0.03125, %v631_v8 }
 0x1cb   :  { %v637_v10 = vsub.f32 %v627_v4, %v635_v9 }
 0x1cc   :  { %v634_v11 = vpop.xlane.xlu0 %633 }
 0x1cd   :  { %v636_v12 = vmul.f32 0.03125, %v634_v11  ;;  %v639_v13 = vmul.f32 %v637_v10, %v637_v10 }
 0x1cf   :  { %v638_v14 = vsub.f32 %v628_v6, %v636_v12  ;;  %v641_v15 = vsel %vm63_vm0, %v639_v13, 0.0 }
 0x1d0   :  { %642 = vadd.xlane.f32.xlu1 %v641_v15 }
 0x1d1   :  { %v640_v16 = vmul.f32 %v638_v14, %v638_v14 }
 0x1d3   :  { %v644_v17 = vsel %vm63_vm0, %v640_v16, 0.0 }
 0x1d4   :  { %645 = vadd.xlane.f32.xlu1 %v644_v17 }
 0x25d   :  { %v643_v18 = vpop.xlane.xlu1 %642 }
 0x25e   :  { %v647_v19 = vmul.f32 0.03125, %v643_v18 }
 0x260   :  { %v649_v20 = vadd.f32 1e-12, %v647_v19 }
 0x261   :  { %v646_v21 = vpop.xlane.xlu1 %645 }
 0x262   :  { %854 = vrsqrt.f32 %v649_v20  ;;  %v648_v22 = vmul.f32 0.03125, %v646_v21 }
 0x264   :  { %v650_v23 = vadd.f32 1e-12, %v648_v22 }
 0x266   :  { %856 = vrsqrt.f32 %v650_v23 }
 0x26c   :  { %v855_v27 = vpop.eup %854 }
 0x26d   :  { %v653_v28 = vmul.f32 %v855_v27, %v637_v10 }
 0x26f   :  { %v659_v30 = vmul.f32 %v658_v26, %v653_v28 }
 0x270   :  { %v857_v31 = vpop.eup %856 }
 0x271   :  { %v654_v32 = vmul.f32 %v857_v31, %v638_v14  ;;  %v665_v33 = vadd.f32 %v664_v29, %v659_v30 }
 0x273   :  { %v660_v34 = vmul.f32 %v658_v26, %v654_v32  ;;  %667 = vst.msk [vmem:[#allocation9] sm:$0xff] %vm63_vm0, %v665_v33 }
 0x275   :  { %v666_v35 = vadd.f32 %v664_v29, %v660_v34 }
 0x277   :  { %668 = vst.msk [vmem:[#allocation9 + $0x8] sm:$0xff] %vm63_vm0, %v666_v35 }
 0x278   :  { %935 = shalt.err (!%p932_p0)
}
 0x279   :  { %s936_s6 = scalar_lea.hbm %s1082_s4, 256 }
 0x27a   :  { %p937_p1 = scmp.ne.s32.totalorder %s1082_s4, %s936_s6  ;;  %p940_p2 = scmp.lt.u32.totalorder %s936_s6, %s1082_s4 }
 0x27c   :  { %p942_p3 = pnand %p940_p2, %p937_p1 }
 0x27e   :  { %945 = shalt.err (!%p942_p3)
}
 0x27f   :  { %680 = dma.vmem_to_hbm [thread:$0]  %s675_s26, 256, %s1082_s4, [#allocation5], %s954_s27, %s954_s27, %s955_s28  }
 0x280   :  { %950 = dma.done.wait [#allocation5], 256  }
 0x281   :  { %951 = vsyncadd [#allocation5], 4294967040 }
 0x282   :  { %684 = vsyncpa [#allocation4], 1 }
 0x283   :  { %685 = vsyncpa [#allocation7], 1 }
 0x284   :  { %686 = vsyncpa [#allocation5], 1 }

</bundles_post_ra>
